<compile_context>
chip_gen: v5e
topology: v5e:2x2
jax: 0.10.0
libtpu: 0.0.40
codegen_flags: <defaults>
</compile_context>

<pallas_src>
import functools

import jax
import jax.numpy as jnp
from jax import lax
from jax.experimental import pallas as pl
from jax.experimental.pallas import tpu as pltpu

BN_EPS = 1e-5
LANE = 128


def _round_up(x, m):
    return (x + m - 1) // m * m


# -----------------------------------------------------------------------------
# Pallas kernel: whole forward fused into one call.
#   in-kernel one-hot + cont placement -> [matmul -> bias -> ReLU]* -> matmul
# -----------------------------------------------------------------------------
def _make_kernel(cat_offsets, oh_width, n_cont, num_layers):
    n_cat = len(cat_offsets)

    def kernel(x_cat_ref, x_cont_ref, w_ref, b_ref, o_ref):
        bb, width = o_ref.shape                      # (block_b, P)
        col = lax.broadcasted_iota(jnp.int32, (bb, width), 1)
        x_cat = x_cat_ref[...]                       # (bb, n_cat) int32
        x_cont = x_cont_ref[...]                     # (bb, n_cont) f32

        # Build the first-layer input directly in lane-padded form:
        #   cols [0, oh_width)              : one-hot of the categorical codes
        #   cols [oh_width, oh_width+n_cont): raw continuous features
        #   remaining cols                  : zeros (matching W rows are zero)
        h = jnp.zeros((bb, width), jnp.float32)
        for j in range(n_cat):
            tgt = x_cat[:, j:j + 1] + cat_offsets[j]             # (bb, 1)
            h = h + (col == tgt).astype(jnp.float32)
        for c in range(n_cont):
            h = h + (col == oh_width + c).astype(jnp.float32) * x_cont[:, c:c + 1]

        # [Linear -> ReLU]* -> Linear.  BN already folded into W/b; Dropout is
        # identity in eval mode.
        for l in range(num_layers):
            h = jnp.dot(h, w_ref[l], preferred_element_type=jnp.float32) + b_ref[l]
            if l < num_layers - 1:
                h = jnp.maximum(h, 0.0)
        o_ref[...] = h

    return kernel


# -----------------------------------------------------------------------------
# Per-call wrapper: batch tiling + one pallas_call + one output slice.
# -----------------------------------------------------------------------------
def mlp_forward(x_cat, x_cont, w_stack, b_stack, *, cat_offsets, oh_width,
                out_sz, block_b=None):
    B, n_cat = x_cat.shape
    n_cont = x_cont.shape[1]
    L, P, _ = w_stack.shape

    if block_b is None:
        # Single fat tile for small/medium batches (no per-grid-step overhead);
        # 1024-row tiles for large batches -> >=2 "parallel" steps so v7x's two
        # TensorCores both get work (no effect on single-TC v5e/v6e).
        block_b = _round_up(B, 8) if B <= 1024 else 1024
    Bp = _round_up(B, block_b)
    if Bp != B:
        x_cat = jnp.pad(x_cat, ((0, Bp - B), (0, 0)))    # index 0 is valid
        x_cont = jnp.pad(x_cont, ((0, Bp - B), (0, 0)))

    kernel = _make_kernel(cat_offsets, oh_width, n_cont, L)

    # Total VMEM is tiny (<2 MiB), so no vmem_limit_bytes override needed.
    out = pl.pallas_call(
        kernel,
        out_shape=jax.ShapeDtypeStruct((Bp, P), jnp.float32),
        grid=(Bp // block_b,),
        in_specs=[
            pl.BlockSpec((block_b, n_cat), lambda i: (i, 0)),
            pl.BlockSpec((block_b, n_cont), lambda i: (i, 0)),
            pl.BlockSpec((L, P, P), lambda i: (0, 0, 0)),
            pl.BlockSpec((L, 1, P), lambda i: (0, 0, 0)),
        ],
        out_specs=pl.BlockSpec((block_b, P), lambda i: (i, 0)),
        compiler_params=pltpu.CompilerParams(
            dimension_semantics=("parallel",)),
    )(x_cat, x_cont, w_stack, b_stack)

    # Single slice: drop batch padding and lane padding at once.
    return out[:B, :out_sz]


# -----------------------------------------------------------------------------
# One-time model-load prep: fold BN + embeddings into the Linears, lane-pad,
# and stack into a single weight/bias tensor.  Runs ONCE, not per forward.
# -----------------------------------------------------------------------------
def prepare_mlp(params):
    emb_tables = params["emb_tables"]
    cards = [int(t.shape[0]) for t in emb_tables]
    nfs = [int(t.shape[1]) for t in emb_tables]
    n_emb = sum(nfs)
    oh_width = sum(cards)

    w1, b1 = params["hidden"][0][0], params["hidden"][0][1]

    # bn_cont (eval mode) folded into the continuous rows of W1.
    inv_std = 1.0 / jnp.sqrt(params["bn_cont_var"] + BN_EPS)
    cont_scale = params["bn_cont_gamma"] * inv_std
    cont_shift = params["bn_cont_beta"] - params["bn_cont_mean"] * cont_scale

    # Embedding lookups folded into W1 as one-hot rows:
    #   row(off_j + v) = emb_tables[j][v] @ W1[emb_slice_j, :]
    rows = []
    emb_off = 0
    for t, nf in zip(emb_tables, nfs):
        rows.append(t @ w1[emb_off:emb_off + nf, :])
        emb_off += nf
    w1_cont = w1[n_emb:, :]
    rows.append(cont_scale[:, None] * w1_cont)
    weights = [jnp.concatenate(rows, axis=0)]            # (oh_width+n_cont, H1)
    biases = [b1 + cont_shift @ w1_cont]

    # Each hidden layer's eval-mode BatchNorm1d (after the ReLU) folds into the
    # NEXT Linear:  W' = diag(s) @ W,  b' = b + t @ W.
    pre_scale = pre_shift = None
    for idx, (w, b, g, be, rm, rv) in enumerate(params["hidden"]):
        if idx > 0:
            weights.append(pre_scale[:, None] * w)
            biases.append(b + pre_shift @ w)
        s = g / jnp.sqrt(rv + BN_EPS)
        pre_shift = be - rm * s
        pre_scale = s
    weights.append(pre_scale[:, None] * params["w_out"])
    biases.append(params["b_out"] + pre_shift @ params["w_out"])

    out_sz = int(params["w_out"].shape[1])

    # Zero-pad every feature dim to 128 lanes (numerically a no-op: padded
    # rows/cols/biases are zero so padded activations stay exactly 0), then
    # stack -> 2 weight/bias DMAs per call instead of 7.
    dims = [int(weights[0].shape[0])] + [int(w.shape[1]) for w in weights]
    P = _round_up(max(dims), LANE)

    def pad2(a):
        return jnp.pad(a, ((0, P - a.shape[0]), (0, P - a.shape[1])))

    w_stack = jnp.stack([pad2(w) for w in weights])                    # (L,P,P)
    b_stack = jnp.stack([jnp.pad(b, (0, P - b.shape[0]))[None, :]
                         for b in biases])                             # (L,1,P)

    cat_offsets = []
    off = 0
    for c in cards:
        cat_offsets.append(off)
        off += c

    meta = dict(cat_offsets=tuple(cat_offsets), oh_width=oh_width, out_sz=out_sz)
    return w_stack, b_stack, meta


# -----------------------------------------------------------------------------
# Deterministic parameter construction + pure-JAX reference (unfused eval mode)
# -----------------------------------------------------------------------------
def build_params(key, emb_szs, n_cont, out_sz, layers):
    keys = jax.random.split(key, 64)
    ki = iter(range(64))

    emb_tables = [
        jax.random.normal(keys[next(ki)], (ni, nf), jnp.float32)
        for (ni, nf) in emb_szs
    ]
    n_emb = sum(nf for _, nf in emb_szs)
    n_in = n_emb + n_cont

    bn_cont_gamma = 1.0 + 0.1 * jax.random.normal(keys[next(ki)], (n_cont,))
    bn_cont_beta = 0.1 * jax.random.normal(keys[next(ki)], (n_cont,))
    bn_cont_mean = jax.random.normal(keys[next(ki)], (n_cont,))
    bn_cont_var = jnp.abs(jax.random.normal(keys[next(ki)], (n_cont,))) + 0.5

    hidden = []
    fan_in = n_in
    for h in layers:
        w = 0.1 * jax.random.normal(keys[next(ki)], (fan_in, h), jnp.float32)
        b = 0.1 * jax.random.normal(keys[next(ki)], (h,), jnp.float32)
        g = 1.0 + 0.1 * jax.random.normal(keys[next(ki)], (h,))
        be = 0.1 * jax.random.normal(keys[next(ki)], (h,))
        rm = 0.1 * jax.random.normal(keys[next(ki)], (h,))
        rv = jnp.abs(jax.random.normal(keys[next(ki)], (h,))) + 0.5
        hidden.append((w, b, g, be, rm, rv))
        fan_in = h

    w_out = 0.1 * jax.random.normal(keys[next(ki)], (fan_in, out_sz), jnp.float32)
    b_out = 0.1 * jax.random.normal(keys[next(ki)], (out_sz,), jnp.float32)

    return dict(
        emb_tables=emb_tables,
        bn_cont_gamma=bn_cont_gamma, bn_cont_beta=bn_cont_beta,
        bn_cont_mean=bn_cont_mean, bn_cont_var=bn_cont_var,
        hidden=hidden, w_out=w_out, b_out=b_out,
    )


def reference_forward(x_cat, x_cont, params):
    embs = [tab[x_cat[:, i]] for i, tab in enumerate(params["emb_tables"])]
    x = jnp.concatenate(embs, axis=1)
    xc = ((x_cont - params["bn_cont_mean"])
          / jnp.sqrt(params["bn_cont_var"] + BN_EPS)
          * params["bn_cont_gamma"] + params["bn_cont_beta"])
    x = jnp.concatenate([x, xc], axis=1)
    for (w, b, g, be, rm, rv) in params["hidden"]:
        x = jnp.maximum(x @ w + b, 0.0)
        x = (x - rm) / jnp.sqrt(rv + BN_EPS) * g + be
    return x @ params["w_out"] + params["b_out"]


# -----------------------------------------------------------------------------
if __name__ == "__main__":
    key = jax.random.PRNGKey(0)

    # insurance.csv categorical cardinalities: sex=2, smoker=2, region=4, children=6
    cat_szs = [2, 2, 4, 6]
    emb_szs = [(s, min(50, (s + 1) // 2)) for s in cat_szs]  # [(2,1),(2,1),(4,2),(6,3)]
    n_cont = 2            # e.g. age, bmi
    out_sz = 1
    layers = [64, 32]
    B = 16

    k_params, k_cat, k_cont = jax.random.split(key, 3)
    params = build_params(k_params, emb_szs, n_cont, out_sz, layers)

    # One-time, model-load-time prep (hoisted out of the per-call path).
    w_stack, b_stack, meta = prepare_mlp(params)
    w_stack, b_stack = jax.block_until_ready((w_stack, b_stack))

    # Per-call path: a single fused pallas_call (+ one output slice).
    fwd = jax.jit(functools.partial(mlp_forward, **meta))

    cat_keys = jax.random.split(k_cat, len(cat_szs))
    x_cat = jnp.stack(
        [jax.random.randint(cat_keys[i], (B,), 0, cat_szs[i], jnp.int32)
         for i in range(len(cat_szs))], axis=1)               # (B, 4) int32
    x_cont = jax.random.normal(k_cont, (B, n_cont), jnp.float32)

    out = fwd(x_cat, x_cont, w_stack, b_stack)
    out = jax.block_until_ready(out)

    ref = reference_forward(x_cat, x_cont, params)
    assert out.shape == (B, out_sz)
    assert jnp.allclose(out, ref, atol=1e-4, rtol=1e-4), (
        f"max err {jnp.max(jnp.abs(out - ref))}")

    # TODO(synk): for B >> 1e5 and out_sz=1, write a batch-major (out_sz, Bp)
    # output (lane-dense along batch) to cut output HBM bytes ~128x.
    print("KERNEL_OK")
</pallas_src>

<mosaic_0001>
module attributes {stable_mosaic.version = 11 : i64} {
  func.func @kernel(%arg0: i32, %arg1: memref<16x4xi32, #tpu.memory_space<vmem>>, %arg2: memref<16x2xf32, #tpu.memory_space<vmem>>, %arg3: memref<3x128x128xf32, #tpu.memory_space<vmem>>, %arg4: memref<3x1x128xf32, #tpu.memory_space<vmem>>, %arg5: memref<16x128xf32, #tpu.memory_space<vmem>>) attributes {dimension_semantics = [#tpu.dimension_semantics<parallel>], iteration_bounds = array<i64: 1>, scalar_prefetch = 0 : i64, scratch_operands = 0 : i64, tpu.core_type = #tpu.core_type<tc>, window_params = [{transform_indices = @transform_0, window_bounds = array<i64: 16, 4>}, {transform_indices = @transform_1, window_bounds = array<i64: 16, 2>}, {pipeline_mode = #tpu.pipeline_mode<synchronous>, transform_indices = @transform_2, window_bounds = array<i64: 3, 128, 128>}, {pipeline_mode = #tpu.pipeline_mode<synchronous>, transform_indices = @transform_3, window_bounds = array<i64: 3, 1, 128>}, {transform_indices = @transform_4, window_bounds = array<i64: 16, 128>}]} {
    %0 = tpu.iota {dimensions = array<i32: 1>} : vector<16x128xi32>
    %c0 = arith.constant 0 : index
    %c0_0 = arith.constant 0 : index
    %1 = vector.load %arg1[%c0, %c0_0] : memref<16x4xi32, #tpu.memory_space<vmem>>, vector<16x4xi32>
    %c0_1 = arith.constant 0 : index
    %c0_2 = arith.constant 0 : index
    %2 = vector.load %arg2[%c0_1, %c0_2] : memref<16x2xf32, #tpu.memory_space<vmem>>, vector<16x2xf32>
    %cst = arith.constant 0.000000e+00 : f32
    %3 = vector.broadcast %cst : f32 to vector<16x128xf32>
    %4 = vector.extract_strided_slice %1 {offsets = [0, 0], sizes = [16, 1], strides = [1, 1]} : vector<16x4xi32> to vector<16x1xi32>
    %c0_i32 = arith.constant 0 : i32
    %5 = vector.broadcast %c0_i32 : i32 to vector<16x1xi32>
    %6 = arith.addi %4, %5 : vector<16x1xi32>
    %7 = vector.broadcast %6 : vector<16x1xi32> to vector<16x128xi32>
    %8 = arith.cmpi eq, %0, %7 : vector<16x128xi32>
    %9 = arith.extui %8 : vector<16x128xi1> to vector<16x128xi32>
    %10 = arith.sitofp %9 : vector<16x128xi32> to vector<16x128xf32>
    %11 = arith.addf %3, %10 : vector<16x128xf32>
    %12 = vector.extract_strided_slice %1 {offsets = [0, 1], sizes = [16, 1], strides = [1, 1]} : vector<16x4xi32> to vector<16x1xi32>
    %c2_i32 = arith.constant 2 : i32
    %13 = vector.broadcast %c2_i32 : i32 to vector<16x1xi32>
    %14 = arith.addi %12, %13 : vector<16x1xi32>
    %15 = vector.broadcast %14 : vector<16x1xi32> to vector<16x128xi32>
    %16 = arith.cmpi eq, %0, %15 : vector<16x128xi32>
    %17 = arith.extui %16 : vector<16x128xi1> to vector<16x128xi32>
    %18 = arith.sitofp %17 : vector<16x128xi32> to vector<16x128xf32>
    %19 = arith.addf %11, %18 : vector<16x128xf32>
    %20 = vector.extract_strided_slice %1 {offsets = [0, 2], sizes = [16, 1], strides = [1, 1]} : vector<16x4xi32> to vector<16x1xi32>
    %c4_i32 = arith.constant 4 : i32
    %21 = vector.broadcast %c4_i32 : i32 to vector<16x1xi32>
    %22 = arith.addi %20, %21 : vector<16x1xi32>
    %23 = vector.broadcast %22 : vector<16x1xi32> to vector<16x128xi32>
    %24 = arith.cmpi eq, %0, %23 : vector<16x128xi32>
    %25 = arith.extui %24 : vector<16x128xi1> to vector<16x128xi32>
    %26 = arith.sitofp %25 : vector<16x128xi32> to vector<16x128xf32>
    %27 = arith.addf %19, %26 : vector<16x128xf32>
    %28 = vector.extract_strided_slice %1 {offsets = [0, 3], sizes = [16, 1], strides = [1, 1]} : vector<16x4xi32> to vector<16x1xi32>
    %c8_i32 = arith.constant 8 : i32
    %29 = vector.broadcast %c8_i32 : i32 to vector<16x1xi32>
    %30 = arith.addi %28, %29 : vector<16x1xi32>
    %31 = vector.broadcast %30 : vector<16x1xi32> to vector<16x128xi32>
    %32 = arith.cmpi eq, %0, %31 : vector<16x128xi32>
    %33 = arith.extui %32 : vector<16x128xi1> to vector<16x128xi32>
    %34 = arith.sitofp %33 : vector<16x128xi32> to vector<16x128xf32>
    %35 = arith.addf %27, %34 : vector<16x128xf32>
    %c14_i32 = arith.constant 14 : i32
    %36 = vector.broadcast %c14_i32 : i32 to vector<16x128xi32>
    %37 = arith.cmpi eq, %0, %36 : vector<16x128xi32>
    %38 = arith.extui %37 : vector<16x128xi1> to vector<16x128xi32>
    %39 = arith.sitofp %38 : vector<16x128xi32> to vector<16x128xf32>
    %40 = vector.extract_strided_slice %2 {offsets = [0, 0], sizes = [16, 1], strides = [1, 1]} : vector<16x2xf32> to vector<16x1xf32>
    %41 = vector.broadcast %40 : vector<16x1xf32> to vector<16x128xf32>
    %42 = arith.mulf %39, %41 : vector<16x128xf32>
    %43 = arith.addf %35, %42 : vector<16x128xf32>
    %c15_i32 = arith.constant 15 : i32
    %44 = vector.broadcast %c15_i32 : i32 to vector<16x128xi32>
    %45 = arith.cmpi eq, %0, %44 : vector<16x128xi32>
    %46 = arith.extui %45 : vector<16x128xi1> to vector<16x128xi32>
    %47 = arith.sitofp %46 : vector<16x128xi32> to vector<16x128xf32>
    %48 = vector.extract_strided_slice %2 {offsets = [0, 1], sizes = [16, 1], strides = [1, 1]} : vector<16x2xf32> to vector<16x1xf32>
    %49 = vector.broadcast %48 : vector<16x1xf32> to vector<16x128xf32>
    %50 = arith.mulf %47, %49 : vector<16x128xf32>
    %51 = arith.addf %43, %50 : vector<16x128xf32>
    %c0_3 = arith.constant 0 : index
    %c0_4 = arith.constant 0 : index
    %c0_5 = arith.constant 0 : index
    %52 = vector.load %arg3[%c0_3, %c0_4, %c0_5] : memref<3x128x128xf32, #tpu.memory_space<vmem>>, vector<1x128x128xf32>
    %53 = vector.shape_cast %52 : vector<1x128x128xf32> to vector<128x128xf32>
    %cst_6 = arith.constant dense<0.000000e+00> : vector<16x128xf32>
    %54 = tpu.matmul %51, %53, %cst_6 {dimension_numbers = #tpu.dot_dimension_numbers<[1], [0], [0], [1], [0, 0, 1, 1], [], []>} : vector<16x128xf32>, vector<128x128xf32>, vector<16x128xf32> -> vector<16x128xf32>
    %c0_7 = arith.constant 0 : index
    %c0_8 = arith.constant 0 : index
    %c0_9 = arith.constant 0 : index
    %55 = vector.load %arg4[%c0_7, %c0_8, %c0_9] : memref<3x1x128xf32, #tpu.memory_space<vmem>>, vector<1x1x128xf32>
    %56 = vector.shape_cast %55 : vector<1x1x128xf32> to vector<1x128xf32>
    %57 = vector.broadcast %56 : vector<1x128xf32> to vector<16x128xf32>
    %58 = arith.addf %54, %57 : vector<16x128xf32>
    %cst_10 = arith.constant 0.000000e+00 : f32
    %59 = vector.broadcast %cst_10 : f32 to vector<16x128xf32>
    %60 = arith.maximumf %58, %59 : vector<16x128xf32>
    %c1 = arith.constant 1 : index
    %c0_11 = arith.constant 0 : index
    %c0_12 = arith.constant 0 : index
    %61 = vector.load %arg3[%c1, %c0_11, %c0_12] : memref<3x128x128xf32, #tpu.memory_space<vmem>>, vector<1x128x128xf32>
    %62 = vector.shape_cast %61 : vector<1x128x128xf32> to vector<128x128xf32>
    %cst_13 = arith.constant dense<0.000000e+00> : vector<16x128xf32>
    %63 = tpu.matmul %60, %62, %cst_13 {dimension_numbers = #tpu.dot_dimension_numbers<[1], [0], [0], [1], [0, 0, 1, 1], [], []>} : vector<16x128xf32>, vector<128x128xf32>, vector<16x128xf32> -> vector<16x128xf32>
    %c1_14 = arith.constant 1 : index
    %c0_15 = arith.constant 0 : index
    %c0_16 = arith.constant 0 : index
    %64 = vector.load %arg4[%c1_14, %c0_15, %c0_16] : memref<3x1x128xf32, #tpu.memory_space<vmem>>, vector<1x1x128xf32>
    %65 = vector.shape_cast %64 : vector<1x1x128xf32> to vector<1x128xf32>
    %66 = vector.broadcast %65 : vector<1x128xf32> to vector<16x128xf32>
    %67 = arith.addf %63, %66 : vector<16x128xf32>
    %cst_17 = arith.constant 0.000000e+00 : f32
    %68 = vector.broadcast %cst_17 : f32 to vector<16x128xf32>
    %69 = arith.maximumf %67, %68 : vector<16x128xf32>
    %c2 = arith.constant 2 : index
    %c0_18 = arith.constant 0 : index
    %c0_19 = arith.constant 0 : index
    %70 = vector.load %arg3[%c2, %c0_18, %c0_19] : memref<3x128x128xf32, #tpu.memory_space<vmem>>, vector<1x128x128xf32>
    %71 = vector.shape_cast %70 : vector<1x128x128xf32> to vector<128x128xf32>
    %cst_20 = arith.constant dense<0.000000e+00> : vector<16x128xf32>
    %72 = tpu.matmul %69, %71, %cst_20 {dimension_numbers = #tpu.dot_dimension_numbers<[1], [0], [0], [1], [0, 0, 1, 1], [], []>} : vector<16x128xf32>, vector<128x128xf32>, vector<16x128xf32> -> vector<16x128xf32>
    %c2_21 = arith.constant 2 : index
    %c0_22 = arith.constant 0 : index
    %c0_23 = arith.constant 0 : index
    %73 = vector.load %arg4[%c2_21, %c0_22, %c0_23] : memref<3x1x128xf32, #tpu.memory_space<vmem>>, vector<1x1x128xf32>
    %74 = vector.shape_cast %73 : vector<1x1x128xf32> to vector<1x128xf32>
    %75 = vector.broadcast %74 : vector<1x128xf32> to vector<16x128xf32>
    %76 = arith.addf %72, %75 : vector<16x128xf32>
    %c0_24 = arith.constant 0 : index
    %c0_25 = arith.constant 0 : index
    %77 = vector.load %arg5[%c0_24, %c0_25] : memref<16x128xf32, #tpu.memory_space<vmem>>, vector<16x128xf32>
    tpu.vector_store %arg5[%c0_24, %c0_25], %76 {strides = array<i32>} : memref<16x128xf32, #tpu.memory_space<vmem>>, vector<16x128xf32>,
    return
  }
  func.func @transform_0(%arg0: i32) -> (i32, i32) {
    %c0_i32 = arith.constant 0 : i32
    %c0_i32_0 = arith.constant 0 : i32
    return %arg0, %c0_i32 : i32, i32
  }
  func.func @transform_1(%arg0: i32) -> (i32, i32) {
    %c0_i32 = arith.constant 0 : i32
    %c0_i32_0 = arith.constant 0 : i32
    return %arg0, %c0_i32 : i32, i32
  }
  func.func @transform_2(%arg0: i32) -> (i32, i32, i32) {
    %c0_i32 = arith.constant 0 : i32
    %c0_i32_0 = arith.constant 0 : i32
    %c0_i32_1 = arith.constant 0 : i32
    %c0_i32_2 = arith.constant 0 : i32
    return %c0_i32, %c0_i32_0, %c0_i32_1 : i32, i32, i32
  }
  func.func @transform_3(%arg0: i32) -> (i32, i32, i32) {
    %c0_i32 = arith.constant 0 : i32
    %c0_i32_0 = arith.constant 0 : i32
    %c0_i32_1 = arith.constant 0 : i32
    %c0_i32_2 = arith.constant 0 : i32
    return %c0_i32, %c0_i32_0, %c0_i32_1 : i32, i32, i32
  }
  func.func @transform_4(%arg0: i32) -> (i32, i32) {
    %c0_i32 = arith.constant 0 : i32
    %c0_i32_0 = arith.constant 0 : i32
    return %arg0, %c0_i32 : i32, i32
  }
}

</mosaic_0001>

<bundles_post_ra>
// kernel: mlp_forward.1
= control target key start
LH: loop header
LB: loop body
LE: loop exit
PB: predicated region body
PF: predicated region fallthrough
CT: control target
= control target key end

     0   :  { %9 = vsyncpa [#allocation3], 0  ;;  %s353_s18 = smov [#allocation2]   ;;  %s354_s20 = smov 128   ;;  %s431_s0 = inlined_call_operand.vmem [shape: s32[16,4], index: 0, kind: input, shape index: {}]   ;;  %s432_s1 = inlined_call_operand.vmem [shape: f32[16,2], index: 1, kind: input, shape index: {}]   ;;  %s433_s2 = inlined_call_operand.hbm [shape: f32[3,128,128], index: 2, kind: input, shape index: {}]   ;;  %s434_s3 = inlined_call_operand.vmem [shape: f32[3,1,128], index: 3, kind: input, shape index: {}]   ;;  %s435_s4 = inlined_call_operand.vmem [shape: f32[16,128], index: 4, kind: output, shape index: {}]  }
   0x1   :  { %s18_s17 = sshll.u32 %s433_s2, 4  ;;  %s20_s19 = sshll.u32 %s353_s18, 4  ;;  %s19_s17 = int_to_ptr.hbm [resolvable:$true] %s18_s17  ;;  %s21_s19 = int_to_ptr.vmem [resolvable:$true] %s20_s19 }
   0x2   :  { %s355_s21 = smov 8  }
   0x3   :  { %26 = dma.hbm_to_vmem [thread:$0]  %s19_s17, 6144, %s21_s19, [#allocation3], %s354_s20, %s354_s20, %s355_s21  }
   0x4   :  { %351 = dma.done.wait [#allocation3], 6144  }
   0x5   :  { %352 = vsyncadd [#allocation3], 4294961152  ;;  %v356_v0 = vmov 0   ;;  %v357_v1 = vmov 1   ;;  %v358_v2 = vmov 2   ;;  %v36_v3 = vld [vmem:[%s431_s0 + $0x8] sm:$0xff]  ;;  %v33_v34 = vlaneseq }
   0x6   :  { %315 = vset.pattern.permute.xlu1 %v356_v0  ;;  %313 = vset.pattern.permute.xlu0 %v357_v1  ;;  %v35_v4 = vld [vmem:[%s431_s0] sm:$0xff]  ;;  %v148_v7 = vld [vmem:[#allocation2 + $0x78] sm:$0xff]  ;;  %v54_v8 = vadd.s32 2, %v36_v3  ;;  %v70_v9 = vadd.s32 4, %v36_v3  ;;  %v86_v11 = vadd.s32 8, %v36_v3  ;;  %v359_v13 = vmov 3  }
   0x7   :  { %317 = vset.pattern.permute.xlu2 %v358_v2  ;;  %43 = vperm.xlu1 %315, %v36_v3   ;;  %v53_v5 = vadd.s32 2, %v35_v4  ;;  %v69_v6 = vadd.s32 4, %v35_v4  ;;  %v85_v10 = vadd.s32 8, %v35_v4  ;;  %v37_v12 = vld [vmem:[%s432_s1] sm:$0xff]  ;;  %v38_v14 = vld [vmem:[%s432_s1 + $0x8] sm:$0xff]  ;;  %v147_v15 = vld [vmem:[#allocation2 + $0x70] sm:$0xff] }
   0x8   :  { %153 = vmatpush.msra.mxu0 %v148_v7  ;;  %289 = vmatpush.msra.mxu3 %v148_v7  ;;  %v146_v16 = vld [vmem:[#allocation2 + $0x68] sm:$0xff]  ;;  %v145_v17 = vld [vmem:[#allocation2 + $0x60] sm:$0xff]  ;;  %v144_v18 = vld [vmem:[#allocation2 + $0x58] sm:$0xff]  ;;  %v403_v35 = vand.u32 127, %v33_v34  ;;  %v360_v42 = vmov 0.0  }
   0x9   :  { %56 = vperm.xlu0 %313, %v53_v5   ;;  %72 = vperm.xlu2 %317, %v69_v6   ;;  %v143_v19 = vld [vmem:[#allocation2 + $0x50] sm:$0xff]  ;;  %v142_v20 = vld [vmem:[#allocation2 + $0x48] sm:$0xff]  ;;  %v141_v21 = vld [vmem:[#allocation2 + $0x40] sm:$0xff] }
   0xa   :  { %154 = vmatpush.msra.mxu0 %v147_v15  ;;  %290 = vmatpush.msra.mxu3 %v147_v15  ;;  %v140_v22 = vld [vmem:[#allocation2 + $0x38] sm:$0xff]  ;;  %v139_v23 = vld [vmem:[#allocation2 + $0x30] sm:$0xff]  ;;  %v138_v24 = vld [vmem:[#allocation2 + $0x28] sm:$0xff]  ;;  %vm101_vm2 = vcmp.eq.s32.totalorder %v403_v35, 14  ;;  %vm118_vm4 = vcmp.eq.s32.totalorder %v403_v35, 15 }
   0xb   :  { %v137_v25 = vld [vmem:[#allocation2 + $0x20] sm:$0xff]  ;;  %v136_v26 = vld [vmem:[#allocation2 + $0x18] sm:$0xff]  ;;  %v135_v28 = vld [vmem:[#allocation2 + $0x10] sm:$0xff]  ;;  %v285_v48 = vsel %vm101_vm2, 1.0, %v360_v42  ;;  %v286_v52 = vsel %vm118_vm4, 1.0, %v360_v42 }
   0xc   :  { %155 = vmatpush.msra.mxu0 %v146_v16  ;;  %291 = vmatpush.msra.mxu3 %v146_v16  ;;  %v134_v29 = vld [vmem:[#allocation2 + $0x8] sm:$0xff]  ;;  %v133_v30 = vld [vmem:[#allocation2] sm:$0xff]  ;;  %v194_v38 = vld [vmem:[#allocation2 + $0xf8] sm:$0xff] }
   0xd   :  { %v193_v39 = vld [vmem:[#allocation2 + $0xf0] sm:$0xff]  ;;  %200 = vmatpush.msra.mxu1 %v194_v38  ;;  %v192_v41 = vld [vmem:[#allocation2 + $0xe8] sm:$0xff]  ;;  %v191_v45 = vld [vmem:[#allocation2 + $0xe0] sm:$0xff] }
   0xe   :  { %156 = vmatpush.msra.mxu0 %v145_v17  ;;  %292 = vmatpush.msra.mxu3 %v145_v17  ;;  %v190_v47 = vld [vmem:[#allocation2 + $0xd8] sm:$0xff]  ;;  %v189_v49 = vld [vmem:[#allocation2 + $0xd0] sm:$0xff]  ;;  %v188_v56 = vld [vmem:[#allocation2 + $0xc8] sm:$0xff] }
   0xf   :  { %316 = vset.pattern.permute.xlu1 %v357_v1  ;;  %201 = vmatpush.msra.mxu1 %v193_v39  ;;  %v187_v61 = vld [vmem:[#allocation2 + $0xc0] sm:$0xff]  ;;  %v186_v63 = vld [vmem:[#allocation2 + $0xb8] sm:$0xff]  ;;  %v185_v2 = vld [vmem:[#allocation2 + $0xb0] sm:$0xff] }
  0x10   :  { %59 = vperm.xlu1 %316, %v54_v8   ;;  %157 = vmatpush.msra.mxu0 %v144_v18  ;;  %v184_v6 = vld [vmem:[#allocation2 + $0xa8] sm:$0xff]  ;;  %v183_v7 = vld [vmem:[#allocation2 + $0xa0] sm:$0xff]  ;;  %v232_v34 = vld [vmem:[#allocation2 + $0x130] sm:$0xff] }
  0x11   :  { %314 = vset.pattern.permute.xlu0 %v356_v0  ;;  %75 = vperm.xlu2 %317, %v70_v9  }
  0x12   :  { %40 = vperm.xlu0 %314, %v35_v4   ;;  %293 = vmatpush.msra.mxu3 %v144_v18  ;;  %v181_v18 = vld [vmem:[#allocation2 + $0x90] sm:$0xff] }
  0x13   :  { %158 = vmatpush.msra.mxu0 %v143_v19  ;;  %202 = vmatpush.msra.mxu1 %v192_v41  ;;  %v228_v41 = vld [vmem:[#allocation2 + $0x110] sm:$0xff] }
  0x14   :  { %294 = vmatpush.msra.mxu3 %v143_v19  ;;  %v180_v19 = vld [vmem:[#allocation2 + $0x88] sm:$0xff] }
  0x15   :  { %159 = vmatpush.msra.mxu0 %v142_v20  ;;  %203 = vmatpush.msra.mxu1 %v191_v45 }
  0x16   :  { %295 = vmatpush.msra.mxu3 %v142_v20  ;;  %v179_v20 = vld [vmem:[#allocation2 + $0x80] sm:$0xff] }
  0x17   :  { %160 = vmatpush.msra.mxu0 %v141_v21  ;;  %204 = vmatpush.msra.mxu1 %v190_v47 }
  0x18   :  { %318 = vset.pattern.permute.xlu1 %v359_v13  ;;  %296 = vmatpush.msra.mxu3 %v141_v21  ;;  %v241_v21 = vld [vmem:[#allocation2 + $0x178] sm:$0xff] }
  0x19   :  { %88 = vperm.xlu1 %318, %v85_v10   ;;  %319 = vset.pattern.permute.xlu2 %v359_v13  ;;  %v182_v10 = vld [vmem:[#allocation2 + $0x98] sm:$0xff] }
  0x1a   :  { %106 = vperm.xlu0 %314, %v37_v12   ;;  %91 = vperm.xlu2 %319, %v86_v11  }
  0x1b   :  { %161 = vmatpush.msra.mxu0 %v140_v22  ;;  %297 = vmatpush.msra.mxu3 %v140_v22  ;;  %v240_v22 = vld [vmem:[#allocation2 + $0x170] sm:$0xff] }
  0x1c   :  { %205 = vmatpush.msra.mxu1 %v189_v49  ;;  %247 = vmatpush.msra.mxu2 %v241_v21 }
  0x1d   :  { %162 = vmatpush.msra.mxu0 %v139_v23  ;;  %298 = vmatpush.msra.mxu3 %v139_v23  ;;  %v239_v23 = vld [vmem:[#allocation2 + $0x168] sm:$0xff] }
  0x1e   :  { %206 = vmatpush.msra.mxu1 %v188_v56  ;;  %248 = vmatpush.msra.mxu2 %v240_v22 }
  0x1f   :  { %163 = vmatpush.msra.mxu0 %v138_v24  ;;  %299 = vmatpush.msra.mxu3 %v138_v24  ;;  %v324_v24 = vld [vmem:[%s434_s3] ss:$0 sm:$0xff] }
  0x20   :  { %207 = vmatpush.msra.mxu1 %v187_v61  ;;  %249 = vmatpush.msra.mxu2 %v239_v23 }
  0x21   :  { %320 = vset.pattern.permute.xlu1 %v356_v0  ;;  %164 = vmatpush.msra.mxu0 %v137_v25 }
  0x22   :  { %111 = vperm.xlu1 %320, %v38_v14   ;;  %321 = vset.pattern.permute.xlu2 %v357_v1 }
  0x23   :  { %122 = vperm.xlu2 %321, %v37_v12   ;;  %323 = vset.pattern.permute.xlu0 %v357_v1 }
  0x24   :  { %300 = vmatpush.msra.mxu3 %v137_v25  ;;  %165 = vmatpush.msra.mxu0 %v136_v26  ;;  %v238_v25 = vld [vmem:[#allocation2 + $0x160] sm:$0xff] }
  0x25   :  { %208 = vmatpush.msra.mxu1 %v186_v63  ;;  %250 = vmatpush.msra.mxu2 %v238_v25 }
  0x26   :  { %301 = vmatpush.msra.mxu3 %v136_v26  ;;  %166 = vmatpush.msra.mxu0 %v135_v28  ;;  %v237_v26 = vld [vmem:[#allocation2 + $0x158] sm:$0xff] }
  0x27   :  { %209 = vmatpush.msra.mxu1 %v185_v2  ;;  %251 = vmatpush.msra.mxu2 %v237_v26 }
  0x28   :  { %302 = vmatpush.msra.mxu3 %v135_v28  ;;  %167 = vmatpush.msra.mxu0 %v134_v29 }
  0x29   :  { %210 = vmatpush.msra.mxu1 %v184_v6 }
  0x2a   :  { %322 = vset.pattern.permute.xlu1 %v357_v1  ;;  %303 = vmatpush.msra.mxu3 %v134_v29  ;;  %v236_v29 = vld [vmem:[#allocation2 + $0x150] sm:$0xff] }
  0x2b   :  { %126 = vperm.xlu1 %322, %v38_v14   ;;  %168 = vmatpush.msra.mxu0 %v133_v30 }
  0x2c   :  { %304 = vmatpush.msra.mxu3 %v133_v30  ;;  %211 = vmatpush.msra.mxu1 %v183_v7 }
  0x2d   :  { %252 = vmatpush.msra.mxu2 %v236_v29 }
  0x2e   :  { %212 = vmatpush.msra.mxu1 %v182_v10 }
  0x30   :  { %213 = vmatpush.msra.mxu1 %v181_v18 }
  0x32   :  { %214 = vmatpush.msra.mxu1 %v180_v19 }
  0x34   :  { %215 = vmatpush.msra.mxu1 %v179_v20 }
  0x63   :  { %v73_v27 = vpop.permute.xlu2 %72 }
  0x64   :  { %vm77_vm3 = vcmp.eq.s32.totalorder %v403_v35, %v73_v27 }
  0x65   :  { %v281_v50 = vsel %vm77_vm3, 1.0, %v360_v42 }
  0x6b   :  { %v401_v31 = vpop.permute.xlu2 %75 }
  0x6c   :  { %vm78_vm8 = vcmp.eq.s32.totalorder %v403_v35, %v401_v31  ;;  %v235_v31 = vld [vmem:[#allocation2 + $0x148] sm:$0xff] }
  0x6d   :  { %v282_v8 = vsel %vm78_vm8, 1.0, %v360_v42  ;;  %253 = vmatpush.msra.mxu2 %v235_v31 }
  0x74   :  { %v92_v36 = vpop.permute.xlu2 %91 }
  0x75   :  { %vm94_vm9 = vcmp.eq.s32.totalorder %v403_v35, %v92_v36  ;;  %v230_v36 = vld [vmem:[#allocation2 + $0x120] sm:$0xff] }
  0x76   :  { %v284_v11 = vsel %vm94_vm9, 1.0, %v360_v42 }
  0x79   :  { %v44_v32 = vpop.permute.xlu1 %43 }
  0x7a   :  { %vm46_vm7 = vcmp.eq.s32.totalorder %v403_v35, %v44_v32  ;;  %v234_v32 = vld [vmem:[#allocation2 + $0x140] sm:$0xff] }
  0x7b   :  { %v57_v33 = vpop.permute.xlu0 %56  ;;  %v278_v3 = vsel %vm46_vm7, 1.0, %v360_v42  ;;  %254 = vmatpush.msra.mxu2 %v234_v32 }
  0x7c   :  { %vm61_vm0 = vcmp.eq.s32.totalorder %v403_v35, %v57_v33  ;;  %v233_v33 = vld [vmem:[#allocation2 + $0x138] sm:$0xff] }
  0x7d   :  { %v279_v43 = vsel %vm61_vm0, 1.0, %v360_v42  ;;  %v123_v53 = vpop.permute.xlu2 %122  ;;  %255 = vmatpush.msra.mxu2 %v233_v33 }
  0x7e   :  { %v129_v60 = vmul.f32 %v286_v52, %v123_v53 }
  0x7f   :  { %256 = vmatpush.msra.mxu2 %v232_v34 }
  0x82   :  { %v60_v37 = vpop.permute.xlu1 %59 }
  0x83   :  { %vm62_vm6 = vcmp.eq.s32.totalorder %v403_v35, %v60_v37  ;;  %v229_v37 = vld [vmem:[#allocation2 + $0x118] sm:$0xff] }
  0x84   :  { %v41_v40 = vpop.permute.xlu0 %40  ;;  %v280_v0 = vsel %vm62_vm6, 1.0, %v360_v42 }
  0x85   :  { %vm45_vm1 = vcmp.eq.s32.totalorder %v403_v35, %v41_v40  ;;  %v68_v4 = vadd.f32 %v280_v0, %v278_v3 }
  0x86   :  { %v277_v44 = vsel %vm45_vm1, 1.0, %v360_v42 }
  0x87   :  { %v67_v46 = vadd.f32 %v279_v43, %v277_v44  ;;  %v84_v9 = vadd.f32 %v282_v8, %v68_v4  ;;  %v226_v43 = vld [vmem:[#allocation2 + $0x100] sm:$0xff] }
  0x88   :  { %v325_v44 = vld [vmem:[%s434_s3 + $0x1] ss:$0 sm:$0xff] }
  0x89   :  { %v83_v54 = vadd.f32 %v281_v50, %v67_v46  ;;  %v100_v13 = vadd.f32 %v284_v11, %v84_v9 }
  0x8b   :  { %v89_v51 = vpop.permute.xlu1 %88 }
  0x8c   :  { %vm93_vm5 = vcmp.eq.s32.totalorder %v403_v35, %v89_v51  ;;  %v107_v55 = vpop.permute.xlu0 %106  ;;  %v231_v35 = vld [vmem:[#allocation2 + $0x128] sm:$0xff]  ;;  %v326_v51 = vld [vmem:[%s434_s3 + $0x2] ss:$0 sm:$0xff] }
  0x8d   :  { %v283_v57 = vsel %vm93_vm5, 1.0, %v360_v42  ;;  %v114_v58 = vmul.f32 %v285_v48, %v107_v55  ;;  %257 = vmatpush.msra.mxu2 %v231_v35  ;;  %v227_v42 = vld [vmem:[#allocation2 + $0x108] sm:$0xff] }
  0x8e   :  { %v99_v59 = vadd.f32 %v283_v57, %v83_v54 }
  0x8f   :  { %258 = vmatpush.msra.mxu2 %v230_v36 }
  0x90   :  { %v116_v62 = vadd.f32 %v114_v58, %v99_v59 }
  0x91   :  { %259 = vmatpush.msra.mxu2 %v229_v37 }
  0x92   :  { %v131_v1 = vadd.f32 %v129_v60, %v116_v62 }
  0x93   :  { %260 = vmatpush.msra.mxu2 %v228_v41 }
  0x94   :  { %v112_v5 = vpop.permute.xlu1 %111  ;;  %169 = vmatmul.f32.vlgmr.msra.gmra.mxu0 %v131_v1 }
  0x95   :  { %v115_v12 = vmul.f32 %v285_v48, %v112_v5  ;;  %261 = vmatpush.msra.mxu2 %v227_v42 }
  0x97   :  { %v117_v15 = vadd.f32 %v115_v12, %v100_v13  ;;  %262 = vmatpush.msra.mxu2 %v226_v43 }
  0x9d   :  { %v127_v14 = vpop.permute.xlu1 %126 }
  0x9e   :  { %v130_v16 = vmul.f32 %v286_v52, %v127_v14 }
  0xa0   :  { %v132_v17 = vadd.f32 %v130_v16, %v117_v15 }
  0xa2   :  { %172 = vmatmul.f32.vlgmr.msra.gmra.mxu3 %v132_v17 }
 0x111   :  { %v170_v27 = vpop.f32.mrf.mxu0 }
 0x112   :  { %v171_v28 = vadd.f32 %v324_v24, %v170_v27 }
 0x114   :  { %v176_v30 = vmax.f32 %v171_v28, 0.0 }
 0x116   :  { %216 = vmatmul.f32.vlgmr.msra.gmra.mxu1 %v176_v30 }
 0x125   :  { %v173_v38 = vpop.f32.mrf.mxu3 }
 0x126   :  { %v174_v39 = vadd.f32 %v324_v24, %v173_v38 }
 0x128   :  { %v177_v40 = vmax.f32 %v174_v39, 0.0 }
 0x12a   :  { %219 = vmatmul.f32.gmra.mxu1 %v177_v40 }
 0x193   :  { %v217_v45 = vpop.f32.mrf.mxu1 }
 0x194   :  { %v218_v46 = vadd.f32 %v325_v44, %v217_v45 }
 0x196   :  { %v223_v47 = vmax.f32 %v218_v46, 0.0 }
 0x198   :  { %263 = vmatmul.f32.vlgmr.msra.gmra.mxu2 %v223_v47 }
 0x1a7   :  { %v220_v48 = vpop.f32.mrf.mxu1 }
 0x1a8   :  { %v221_v49 = vadd.f32 %v325_v44, %v220_v48 }
 0x1aa   :  { %v224_v50 = vmax.f32 %v221_v49, 0.0 }
 0x1ac   :  { %266 = vmatmul.f32.gmra.mxu2 %v224_v50 }
 0x21b   :  { %v264_v52 = vpop.f32.mrf.mxu2 }
 0x21c   :  { %v265_v53 = vadd.f32 %v326_v51, %v264_v52 }
 0x21e   :  { %270 = vst [vmem:[%s435_s4] sm:$0xff] %v265_v53 }
 0x22f   :  { %v267_v54 = vpop.f32.mrf.mxu2 }
 0x230   :  { %v268_v55 = vadd.f32 %v326_v51, %v267_v54 }
 0x232   :  { %271 = vst [vmem:[%s435_s4 + $0x8] sm:$0xff] %v268_v55 }
 0x233   :  { %276 = vsyncpa [#allocation3], 1 }

</bundles_post_ra>
